<compile_context>
chip_gen: v7x
topology: tpu7x:2x2x1
jax: 0.10.0
libtpu: 0.0.40
codegen_flags: <defaults>
</compile_context>

<pallas_src>
import jax
import jax.numpy as jnp
from jax.experimental import pallas as pl
from jax.experimental.pallas import tpu as pltpu

_IN_FEATURES = 2
_HIDDEN = 32

# Largest batch tile (lanes).  At bt=32768 the per-step working set is roughly:
# h (32, bt) f32 ~ 4 MiB + double-buffered x/out tiles ~ 4 MiB + temps, i.e.
# ~10 MiB -- safe within the scoped-VMEM budget on v5e / v6e / v7x.
_MAX_BATCH_TILE = 32768
# Aim for >= 2 grid tiles so dimension_semantics=("parallel",) can shard the
# batch axis across both TensorCores on v7x.
_MIN_TILES = 2


def _round_up(n, m):
    return ((n + m - 1) // m) * m


def _choose_batch_tile(batch, batch_tile=None):
    """Pick a lane-dense (multiple-of-128) batch tile derived from the batch size."""
    b128 = _round_up(max(batch, 1), 128)
    if batch_tile is None:
        # Derive the tile from B: bound last-tile padding and keep >= 2 tiles
        # when the batch is large enough.
        n_target = max(_MIN_TILES, pl.cdiv(b128, _MAX_BATCH_TILE))
        bt = _round_up(pl.cdiv(b128, n_target), 128)
    else:
        # Force a multiple of 128 regardless of the user-passed value; a
        # non-128 lane tile either fails to lower or degrades to masked
        # partial stores (the lane-density penalty this layout avoids).
        bt = _round_up(min(batch_tile, b128), 128)
    bt = min(bt, _MAX_BATCH_TILE)
    b_pad = _round_up(b128, bt)
    return bt, b_pad, b_pad // bt


def _qnet_kernel(x_ref, w1_ref, b1_ref, w2_ref, b2_ref, o_ref):
    # Transposed (feature-major) layout: batch sits on lanes.
    #   x_ref : (2,  Bt)    w1_ref: (32, 2)   b1_ref: (32, 1)
    #   w2_ref: (A, 32)     b2_ref: (A, 1)    o_ref : (A,  Bt)
    x_t = x_ref[...]
    w1 = w1_ref[...]
    # Layer 1 on the VPU: K=2, so two broadcast FMAs (sublane-broadcast of the
    # two x rows, lane-broadcast of the W1 columns) beat an MXU push/drain.
    h = w1[:, 0:1] * x_t[0:1, :] + w1[:, 1:2] * x_t[1:2, :] + b1_ref[...]
    h = jnp.maximum(h, 0.0)                                     # (32, Bt) ReLU
    # Layer 2 on the MXU (K=32): out^T = W2 @ h^T + b2.
    out = jnp.dot(w2_ref[...], h, preferred_element_type=jnp.float32)
    o_ref[...] = (out + b2_ref[...]).astype(o_ref.dtype)
    # Note: padded batch columns compute relu(b1) @ W2^T + b2 (not zeros); they
    # are sliced off by the wrapper.  Any future in-kernel reduction over the
    # batch axis must mask them.


def qnetwork_forward_feature_major(x_t, w1, b1, w2, b2, *, batch_tile=None):
    """Fast path: x_t is (2, B) feature-major; returns (A, B) feature-major.

    No wrapper-side transposes; when B is already a multiple of the chosen
    batch tile there is no padding copy either, so the only HBM traffic is the
    kernel's own ~24 B/sample.
    """
    assert x_t.shape[0] == _IN_FEATURES
    B = x_t.shape[1]
    A = w2.shape[0]

    bt, b_pad, n_tiles = _choose_batch_tile(B, batch_tile)
    if b_pad != B:
        x_t = jnp.pad(x_t, ((0, 0), (0, b_pad - B)))            # (2, B_pad)

    b1_2d = b1.reshape(-1, 1)                                   # (32, 1)
    b2_2d = b2.reshape(-1, 1)                                   # (A, 1)

    # Advisory cost so XLA schedules this memory-bound custom call correctly.
    flops = 2 * b_pad * (_IN_FEATURES * _HIDDEN + _HIDDEN * A) + b_pad * (2 * _HIDDEN + A)
    bytes_accessed = 4 * (b_pad * (_IN_FEATURES + A)
                          + w1.size + b1.size + w2.size + b2.size)
    cost = pl.CostEstimate(flops=flops, transcendentals=0, bytes_accessed=bytes_accessed)

    out_t = pl.pallas_call(
        _qnet_kernel,
        out_shape=jax.ShapeDtypeStruct((A, b_pad), jnp.float32),
        grid=(n_tiles,),
        in_specs=[
            pl.BlockSpec((_IN_FEATURES, bt), lambda i: (0, i)),  # x^T tile (pipelined)
            pl.BlockSpec((_HIDDEN, _IN_FEATURES), lambda i: (0, 0)),  # W1 (resident)
            pl.BlockSpec((_HIDDEN, 1), lambda i: (0, 0)),        # b1 (resident)
            pl.BlockSpec((A, _HIDDEN), lambda i: (0, 0)),        # W2 (resident)
            pl.BlockSpec((A, 1), lambda i: (0, 0)),              # b2 (resident)
        ],
        out_specs=pl.BlockSpec((A, bt), lambda i: (0, i)),       # out^T tile, lane-dense
        compiler_params=pltpu.CompilerParams(
            dimension_semantics=("parallel",),                   # shard batch across TCs (v7x)
            vmem_limit_bytes=32 * 1024 * 1024,                   # headroom for large tiles on all gens
        ),
        cost_estimate=cost,
    )(x_t, w1, b1_2d, w2, b2_2d)

    return out_t if b_pad == B else out_t[:, :B]


def qnetwork_forward(x, w1, b1, w2, b2, *, batch_tile=None):
    """PyTorch-interface-compatible wrapper: relu(x @ W1^T + b1) @ W2^T + b2.

    x : (B, 2) f32
    w1: (32, 2), b1: (32,)   (PyTorch nn.Linear (out_features, in_features) layout)
    w2: (A, 32), b2: (A,)
    returns (B, A) f32

    Note: this path pays for the x / out layout conversion; performance-critical
    callers should use `qnetwork_forward_feature_major` with (2, B) inputs.
    """
    out_t = qnetwork_forward_feature_major(x.T, w1, b1, w2, b2, batch_tile=batch_tile)
    return out_t.T


def _torch_like_linear_init(key, in_features, out_features):
    """Deterministic init mimicking nn.Linear's U(-1/sqrt(fan_in), 1/sqrt(fan_in))."""
    kw, kb = jax.random.split(key)
    bound = 1.0 / (in_features ** 0.5)
    # PyTorch nn.Linear stores weight as (out_features, in_features).
    w = jax.random.uniform(kw, (out_features, in_features), jnp.float32,
                           minval=-bound, maxval=bound)
    b = jax.random.uniform(kb, (out_features,), jnp.float32,
                           minval=-bound, maxval=bound)
    return w, b


def _ref(x, w1, b1, w2, b2):
    return jnp.maximum(x @ w1.T + b1, 0.0) @ w2.T + b2


if __name__ == "__main__":
    n_actions = 4

    root = jax.random.PRNGKey(0)
    k_l1, k_l2, k_a, k_b, k_c = jax.random.split(root, 5)

    w1, b1 = _torch_like_linear_init(k_l1, 2, 32)
    w2, b2 = _torch_like_linear_init(k_l2, 32, n_actions)

    # 1) Tiny batch (the module's intended toy use) via the PyTorch-style API.
    x = jax.random.normal(k_a, (8, 2), jnp.float32)
    out = qnetwork_forward(x, w1, b1, w2, b2)
    jax.block_until_ready(out)
    assert out.shape == (8, n_actions)
    assert jnp.allclose(out, _ref(x, w1, b1, w2, b2), atol=1e-5, rtol=1e-5)

    # 2) Ragged batch with a deliberately non-128 batch_tile: exercises the
    #    forced rounding to 128 lanes, the multi-step grid with resident
    #    weights, and the padded final tile.
    x2 = jax.random.normal(k_b, (300, 2), jnp.float32)
    out2 = qnetwork_forward(x2, w1, b1, w2, b2, batch_tile=100)
    jax.block_until_ready(out2)
    assert out2.shape == (300, n_actions)
    assert jnp.allclose(out2, _ref(x2, w1, b1, w2, b2), atol=1e-5, rtol=1e-5)

    # 3) Auto-tiled batch: tile derived from B, >= 2 tiles for v7x megacore.
    x3 = jax.random.normal(k_c, (2048, 2), jnp.float32)
    out3 = qnetwork_forward(x3, w1, b1, w2, b2)
    jax.block_until_ready(out3)
    assert out3.shape == (2048, n_actions)
    assert jnp.allclose(out3, _ref(x3, w1, b1, w2, b2), atol=1e-5, rtol=1e-5)

    # 4) Feature-major fast path: (2, B) in, (A, B) out, no wrapper transposes
    #    and no padding copy (B is a multiple of the chosen tile).
    xs = x3[:256]
    out4_t = qnetwork_forward_feature_major(xs.T, w1, b1, w2, b2)
    jax.block_until_ready(out4_t)
    assert out4_t.shape == (n_actions, 256)
    assert jnp.allclose(out4_t, _ref(xs, w1, b1, w2, b2).T, atol=1e-5, rtol=1e-5)

    print("KERNEL_OK")
</pallas_src>

<mosaic_0001>
module attributes {stable_mosaic.version = 11 : i64} {
  func.func @_qnet_kernel(%arg0: i32, %arg1: memref<2x128xf32, #tpu.memory_space<vmem>>, %arg2: memref<32x2xf32, #tpu.memory_space<vmem>>, %arg3: memref<32x1xf32, #tpu.memory_space<vmem>>, %arg4: memref<4x32xf32, #tpu.memory_space<vmem>>, %arg5: memref<4x1xf32, #tpu.memory_space<vmem>>, %arg6: memref<4x128xf32, #tpu.memory_space<vmem>>) attributes {dimension_semantics = [#tpu.dimension_semantics<parallel>], iteration_bounds = array<i64: 1>, scalar_prefetch = 0 : i64, scratch_operands = 0 : i64, tpu.core_type = #tpu.core_type<tc>, window_params = [{transform_indices = @transform_0, window_bounds = array<i64: 2, 128>}, {pipeline_mode = #tpu.pipeline_mode<synchronous>, transform_indices = @transform_1, window_bounds = array<i64: 32, 2>}, {pipeline_mode = #tpu.pipeline_mode<synchronous>, transform_indices = @transform_2, window_bounds = array<i64: 32, 1>}, {pipeline_mode = #tpu.pipeline_mode<synchronous>, transform_indices = @transform_3, window_bounds = array<i64: 4, 32>}, {pipeline_mode = #tpu.pipeline_mode<synchronous>, transform_indices = @transform_4, window_bounds = array<i64: 4, 1>}, {transform_indices = @transform_5, window_bounds = array<i64: 4, 128>}]} {
    %c0 = arith.constant 0 : index
    %c0_0 = arith.constant 0 : index
    %0 = vector.load %arg1[%c0, %c0_0] : memref<2x128xf32, #tpu.memory_space<vmem>>, vector<2x128xf32>
    %c0_1 = arith.constant 0 : index
    %c0_2 = arith.constant 0 : index
    %1 = vector.load %arg2[%c0_1, %c0_2] : memref<32x2xf32, #tpu.memory_space<vmem>>, vector<32x2xf32>
    %2 = vector.extract_strided_slice %1 {offsets = [0, 0], sizes = [32, 1], strides = [1, 1]} : vector<32x2xf32> to vector<32x1xf32>
    %3 = vector.extract_strided_slice %0 {offsets = [0, 0], sizes = [1, 128], strides = [1, 1]} : vector<2x128xf32> to vector<1x128xf32>
    %4 = vector.broadcast %2 : vector<32x1xf32> to vector<32x128xf32>
    %5 = vector.broadcast %3 : vector<1x128xf32> to vector<32x128xf32>
    %6 = arith.mulf %4, %5 : vector<32x128xf32>
    %7 = vector.extract_strided_slice %1 {offsets = [0, 1], sizes = [32, 1], strides = [1, 1]} : vector<32x2xf32> to vector<32x1xf32>
    %8 = vector.extract_strided_slice %0 {offsets = [1, 0], sizes = [1, 128], strides = [1, 1]} : vector<2x128xf32> to vector<1x128xf32>
    %9 = vector.broadcast %7 : vector<32x1xf32> to vector<32x128xf32>
    %10 = vector.broadcast %8 : vector<1x128xf32> to vector<32x128xf32>
    %11 = arith.mulf %9, %10 : vector<32x128xf32>
    %12 = arith.addf %6, %11 : vector<32x128xf32>
    %c0_3 = arith.constant 0 : index
    %c0_4 = arith.constant 0 : index
    %13 = vector.load %arg3[%c0_3, %c0_4] : memref<32x1xf32, #tpu.memory_space<vmem>>, vector<32x1xf32>
    %14 = vector.broadcast %13 : vector<32x1xf32> to vector<32x128xf32>
    %15 = arith.addf %12, %14 : vector<32x128xf32>
    %cst = arith.constant 0.000000e+00 : f32
    %16 = vector.broadcast %cst : f32 to vector<32x128xf32>
    %17 = arith.maximumf %15, %16 : vector<32x128xf32>
    %c0_5 = arith.constant 0 : index
    %c0_6 = arith.constant 0 : index
    %18 = vector.load %arg4[%c0_5, %c0_6] : memref<4x32xf32, #tpu.memory_space<vmem>>, vector<4x32xf32>
    %cst_7 = arith.constant dense<0.000000e+00> : vector<4x128xf32>
    %19 = tpu.matmul %18, %17, %cst_7 {dimension_numbers = #tpu.dot_dimension_numbers<[1], [0], [0], [1], [0, 0, 1, 1], [], []>} : vector<4x32xf32>, vector<32x128xf32>, vector<4x128xf32> -> vector<4x128xf32>
    %c0_8 = arith.constant 0 : index
    %c0_9 = arith.constant 0 : index
    %20 = vector.load %arg5[%c0_8, %c0_9] : memref<4x1xf32, #tpu.memory_space<vmem>>, vector<4x1xf32>
    %21 = vector.broadcast %20 : vector<4x1xf32> to vector<4x128xf32>
    %22 = arith.addf %19, %21 : vector<4x128xf32>
    %c0_10 = arith.constant 0 : index
    %c0_11 = arith.constant 0 : index
    %23 = vector.load %arg6[%c0_10, %c0_11] : memref<4x128xf32, #tpu.memory_space<vmem>>, vector<4x128xf32>
    tpu.vector_store %arg6[%c0_10, %c0_11], %22 {strides = array<i32>} : memref<4x128xf32, #tpu.memory_space<vmem>>, vector<4x128xf32>,
    return
  }
  func.func @transform_0(%arg0: i32) -> (i32, i32) {
    %c0_i32 = arith.constant 0 : i32
    %c0_i32_0 = arith.constant 0 : i32
    return %c0_i32, %arg0 : i32, i32
  }
  func.func @transform_1(%arg0: i32) -> (i32, i32) {
    %c0_i32 = arith.constant 0 : i32
    %c0_i32_0 = arith.constant 0 : i32
    %c0_i32_1 = arith.constant 0 : i32
    return %c0_i32, %c0_i32_0 : i32, i32
  }
  func.func @transform_2(%arg0: i32) -> (i32, i32) {
    %c0_i32 = arith.constant 0 : i32
    %c0_i32_0 = arith.constant 0 : i32
    %c0_i32_1 = arith.constant 0 : i32
    return %c0_i32, %c0_i32_0 : i32, i32
  }
  func.func @transform_3(%arg0: i32) -> (i32, i32) {
    %c0_i32 = arith.constant 0 : i32
    %c0_i32_0 = arith.constant 0 : i32
    %c0_i32_1 = arith.constant 0 : i32
    return %c0_i32, %c0_i32_0 : i32, i32
  }
  func.func @transform_4(%arg0: i32) -> (i32, i32) {
    %c0_i32 = arith.constant 0 : i32
    %c0_i32_0 = arith.constant 0 : i32
    %c0_i32_1 = arith.constant 0 : i32
    return %c0_i32, %c0_i32_0 : i32, i32
  }
  func.func @transform_5(%arg0: i32) -> (i32, i32) {
    %c0_i32 = arith.constant 0 : i32
    %c0_i32_0 = arith.constant 0 : i32
    return %c0_i32, %arg0 : i32, i32
  }
}

</mosaic_0001>

<bundles_post_ra>
// kernel: tpu_custom_call.1
= control target key start
LH: loop header
LB: loop body
LE: loop exit
PB: predicated region body
PF: predicated region fallthrough
CT: control target
= control target key end

     0   :  { %v269_v2 = vmov 1   ;;  %s350_s0 = inlined_call_operand.vmem [shape: f32[2,128], index: 0, kind: input, shape index: {}]   ;;  %s351_s1 = inlined_call_operand.vmem [shape: f32[32,2], index: 1, kind: input, shape index: {}]   ;;  %s352_s2 = inlined_call_operand.vmem [shape: f32[32,1], index: 2, kind: input, shape index: {}]   ;;  %s353_s3 = inlined_call_operand.vmem [shape: f32[4,32], index: 3, kind: input, shape index: {}]   ;;  %s354_s4 = inlined_call_operand.vmem [shape: f32[4,1], index: 4, kind: input, shape index: {}]   ;;  %s355_s5 = inlined_call_operand.hbm [shape: f32[4,128], index: 5, kind: output, shape index: {}]  }
   0x1   :  { %v24_v0 = vld [vmem:[%s351_s1 + $0x10] sm:$0xff]  ;;  %v22_v1 = vld [vmem:[%s351_s1] sm:$0xff]  ;;  %241 = vset.pattern.permute.xlu0 %v269_v2  ;;  %239 = vset.pattern.permute.xlu1 %v269_v2  ;;  %v23_v3 = vld [vmem:[%s351_s1 + $0x8] sm:$0xff] }
   0x2   :  { %63 = vperm.xlu0 %241, %v24_v0   ;;  %55 = vperm.xlu1 %239, %v22_v1  }
   0x3   :  { %10 = vsyncpa [#allocation3], 0  ;;  %v270_v4 = vmov 0   ;;  %v25_v5 = vld [vmem:[%s351_s1 + $0x18] sm:$0xff]  ;;  %v83_v6 = vld [vmem:[%s352_s2 + $0x8] sm:$0xff]  ;;  %v271_v11 = vmov 0.0|0.0   ;;  %v46_v13 = vlaneseq }
   0x4   :  { %v82_v7 = vld [vmem:[%s352_s2] sm:$0xff]  ;;  %v84_v9 = vld [vmem:[%s352_s2 + $0x10] sm:$0xff]  ;;  %v85_v10 = vld [vmem:[%s352_s2 + $0x18] sm:$0xff]  ;;  %227 = vmatprep.subr.bf16.mxu0 %v271_v11  ;;  %vm272_vm0 = vmmov 0   ;;  %v273_v12 = vmov 0.0   ;;  %vm121_vm1 = vcmask 261120  }
   0x5   :  { %v115_v8 = vld [vmem:[%s354_s4] sm:$0xf]  ;;  %224 = vmatprep.mubr.msk.f32.mxu0 %vm272_vm0, %v273_v12  ;;  %v47_v16 = vshrl.u32 %v46_v13, 7  ;;  %s274_s11 = smov [#allocation2]  }
   0x6   :  { %242 = vset.pattern.permute.xlu0 %v270_v4  ;;  %59 = vperm.xlu1 %239, %v23_v3   ;;  %v21_v21 = vld [vmem:[%s350_s0] sm:$0x3]  ;;  %s202_s12 = sshll.u32 %s274_s11, 4  ;;  %s203_s12 = int_to_ptr.vmem [resolvable:$true] %s202_s12 }
   0x7   :  { %28 = vperm.xlu0 %242, %v22_v1   ;;  %v48_v19 = vsub.s32 0, %v47_v16  ;;  %v72_v20 = vsub.s32 1, %v47_v16  ;;  %v114_v54 = vld [vmem:[%s353_s3] sm:$0xf]  ;;  %s245_s13 = scalar_lea.vmem %s203_s12, 64  ;;  %p250_p1 = scmp.lt.s32.totalorder %s203_s12, %s203_s12 }
   0x8   :  { %p246_p0 = scmp.ne.s32.totalorder %s203_s12, %s245_s13  ;;  %p251_p2 = scmp.lt.s32.totalorder %s245_s13, %s245_s13 }
   0x9   :  { %v49_v24 = vrot.slane %v21_v21, %v48_v19  ;;  %v73_v25 = vrot.slane %v21_v21, %v72_v20 }
   0xa   :  { %240 = vset.pattern.permute.xlu1 %v270_v4  ;;  %p252_p3 = por %p251_p2, %p250_p1 }
   0xb   :  { %33 = vperm.xlu0 %242, %v23_v3   ;;  %43 = vperm.xlu1 %240, %v25_v5  }
   0xc   :  { %p253_p4 = pnand %p252_p3, %p246_p0 }
   0xf   :  { %38 = vperm.xlu0 %242, %v24_v0   ;;  %243 = vset.pattern.permute.xlu1 %v269_v2 }
  0x10   :  { %67 = vperm.xlu1 %243, %v25_v5  }
  0x13   :  { %93 = vperm.xlu0 %242, %v83_v6  }
  0x14   :  { %244 = vset.pattern.permute.xlu1 %v270_v4 }
  0x15   :  { %88 = vperm.xlu1 %244, %v82_v7  }
  0x17   :  { %118 = vperm.xlu0 %242, %v115_v8  }
  0x19   :  { %98 = vperm.xlu1 %244, %v84_v9  }
  0x1d   :  { %103 = vperm.xlu1 %244, %v85_v10  }
  0x81   :  { %v56_v14 = vpop.permute.xlu1 %55  ;;  %v64_v15 = vpop.permute.xlu0 %63 }
  0x82   :  { %v74_v31 = vmul.f32 %v73_v25, %v56_v14  ;;  %v76_v39 = vmul.f32 %v73_v25, %v64_v15 }
  0x85   :  { %v60_v17 = vpop.permute.xlu1 %59 }
  0x86   :  { %v29_v18 = vpop.permute.xlu0 %28  ;;  %v75_v28 = vmul.f32 %v73_v25, %v60_v17 }
  0x87   :  { %v50_v29 = vmul.f32 %v49_v24, %v29_v18 }
  0x89   :  { %v78_v35 = vadd.f32 %v74_v31, %v50_v29 }
  0x8a   :  { %v34_v22 = vpop.permute.xlu0 %33  ;;  %v44_v23 = vpop.permute.xlu1 %43 }
  0x8b   :  { %v51_v26 = vmul.f32 %v49_v24, %v34_v22  ;;  %v53_v44 = vmul.f32 %v49_v24, %v44_v23 }
  0x8d   :  { %v79_v32 = vadd.f32 %v75_v28, %v51_v26 }
  0x8e   :  { %v39_v27 = vpop.permute.xlu0 %38 }
  0x8f   :  { %v68_v30 = vpop.permute.xlu1 %67  ;;  %v52_v37 = vmul.f32 %v49_v24, %v39_v27 }
  0x90   :  { %v77_v40 = vmul.f32 %v73_v25, %v68_v30 }
  0x91   :  { %v80_v45 = vadd.f32 %v76_v39, %v52_v37 }
  0x92   :  { %v94_v33 = vpop.permute.xlu0 %93  ;;  %v81_v48 = vadd.f32 %v77_v40, %v53_v44 }
  0x93   :  { %v107_v34 = vadd.f32 %v94_v33, %v79_v32 }
  0x94   :  { %v89_v36 = vpop.permute.xlu1 %88 }
  0x95   :  { %v106_v38 = vadd.f32 %v89_v36, %v78_v35  ;;  %v111_v41 = vmax.f32 %v107_v34, 0.0 }
  0x96   :  { %v119_v55 = vpop.permute.xlu0 %118 }
  0x97   :  { %v110_v42 = vmax.f32 %v106_v38, 0.0 }
  0x98   :  { %v99_v43 = vpop.permute.xlu1 %98 }
  0x99   :  { %v228_v46 = vpack.c.bf16 %v111_v41, %v110_v42  ;;  %v108_v47 = vadd.f32 %v99_v43, %v80_v45 }
  0x9b   :  { %229 = vmatpush3.bf16.msra.mxu0 %v228_v46  ;;  %v112_v51 = vmax.f32 %v108_v47, 0.0 }
  0x9c   :  { %v104_v49 = vpop.permute.xlu1 %103  ;;  %230 = vmatprep.subr.bf16.mxu0 %v271_v11 }
  0x9d   :  { %v109_v50 = vadd.f32 %v104_v49, %v81_v48 }
  0x9f   :  { %v113_v52 = vmax.f32 %v109_v50, 0.0 }
  0xa1   :  { %v231_v53 = vpack.c.bf16 %v113_v52, %v112_v51 }
  0xa3   :  { %232 = vmatpush3.bf16.msra.mxu0 %v231_v53 }
  0xa6   :  { %225 = vmatmul.mubr.msk.f32.vlgmr.msra.gmra.mrb[0].mxu0 %vm121_vm1, %v114_v54 }
 0x179   :  { %v191_v56 = vpop.f32.mrb[0].mxu0 }
 0x17a   :  { %v192_v57 = vadd.f32 %v191_v56, %v119_v55  ;;  %v226_v58 = vpop.f32.mrb[1].mxu0 }
 0x17c   :  { %195 = vst [vmem:[#allocation2] sm:$0xf] %v192_v57 }
 0x17d   :  { %256 = shalt.err (!%p253_p4)
}
 0x17e   :  { %s257_s3 = scalar_lea.hbm %s355_s5, 64 }
 0x17f   :  { %p258_p5 = scmp.ne.s32.totalorder %s355_s5, %s257_s3  ;;  %p261_p6 = scmp.lt.u32.totalorder %s257_s3, %s355_s5 }
 0x181   :  { %p263_p7 = pnand %p261_p6, %p258_p5 }
 0x183   :  { %266 = shalt.err (!%p263_p7)
}
 0x184   :  { %205 = dma.vmem_to_hbm [thread:$0]  %s203_s12, 64, %s355_s5, [#allocation3]  }
 0x185   :  { %267 = dma.done.wait [#allocation3], 64  }
 0x186   :  { %268 = vsyncadd [#allocation3], 4294967232 }
 0x187   :  { %209 = vsyncpa [#allocation3], 1 }

</bundles_post_ra>
